<compile_context>
chip_gen: v6e
topology: v6e:2x2x1
jax: 0.10.0
libtpu: 0.0.40
codegen_flags: <defaults>
</compile_context>

<pallas_src>
import jax
import jax.numpy as jnp
from jax.experimental import pallas as pl
from jax.experimental.pallas import tpu as pltpu


def _linear_kernel(x_ref, w_ref, b_ref, o_ref):
    # MXU matmul with f32 accumulation + bias add on the VPU, all in VMEM.
    acc = jnp.dot(x_ref[...], w_ref[...], preferred_element_type=jnp.float32)
    o_ref[...] = (acc + b_ref[...].astype(jnp.float32)).astype(o_ref.dtype)


def _round_up(n, m):
    return ((n + m - 1) // m) * m


# Below this row count the whole op is launch/DMA overhead; let XLA fuse it.
_PALLAS_MIN_ROWS = 2048


def simple_nn_forward(x, w, b, *, tm=8192, force_pallas=False):
    """y = x @ w + b.

    x: (B, IN)   activations (f32 or bf16)
    w: (IN, OUT) pre-transposed PyTorch weight (nn.Linear stores (OUT, IN))
    b: (1, OUT)  bias
    returns (B, OUT) in x.dtype
    """
    B, in_f = x.shape
    in_f_w, out_f = w.shape
    assert in_f_w == in_f, "w must be pre-transposed to (IN, OUT)"

    # Small/medium batch: skip the standalone pallas_call entirely so XLA can
    # fuse this Linear into the producer of x (single largest win at B=8/37).
    if B < _PALLAS_MIN_ROWS and not force_pallas:
        acc = jnp.dot(x, w, preferred_element_type=jnp.float32)
        return (acc + b.astype(jnp.float32)).astype(x.dtype)

    itemsize = jnp.dtype(x.dtype).itemsize
    # Sublane packing: 8 rows for 32-bit dtypes, 16 for bf16/fp16.
    align = 8 if itemsize >= 4 else 16
    lane_bytes = 128 * itemsize  # last dim pads to 128 lanes in VMEM

    # Cap tm so double-buffered, lane-padded x + y tiles (~4*tm*lane_bytes)
    # stay under ~40 MiB — safe even on v7x's 64 MiB VMEM.
    tm_cap = max(align, ((40 << 20) // (4 * lane_bytes)) // align * align)
    tm = max(align, min(_round_up(tm, align), tm_cap, _round_up(B, align)))
    grid_m = pl.cdiv(B, tm)
    # Prefer >= 2 grid steps for large single-tile batches so the "parallel"
    # axis can shard across v7x's two TensorCores (harmless on v5e/v6e).
    if grid_m == 1 and B > 2 * align:
        tm = _round_up(pl.cdiv(B, 2), align)
        grid_m = pl.cdiv(B, tm)

    # Raise the scoped VMEM limit to cover the lane-padded double buffers
    # (v5e's default scoped limit is only 16 MiB); leave headroom, never the
    # full physical VMEM.
    tile_vmem = 4 * tm * lane_bytes
    vmem_limit = int(min(56 << 20, max(32 << 20, tile_vmem + (8 << 20))))

    bytes_accessed = (B * in_f + B * out_f) * itemsize + (in_f * out_f + out_f) * 4
    cost = pl.CostEstimate(
        flops=2 * B * in_f * out_f,
        transcendentals=0,
        bytes_accessed=bytes_accessed,
    )

    # No pad / slice: the last block overhangs and Pallas masks the
    # out-of-bounds output rows on writeback.
    out = pl.pallas_call(
        _linear_kernel,
        out_shape=jax.ShapeDtypeStruct((B, out_f), x.dtype),
        grid=(grid_m,),
        in_specs=[
            # Batch-tiled activations.
            pl.BlockSpec((tm, in_f), lambda i: (i, 0)),
            # Weight + bias: constant index_map -> VMEM-resident across grid.
            pl.BlockSpec((in_f, out_f), lambda i: (0, 0)),
            pl.BlockSpec((1, out_f), lambda i: (0, 0)),
        ],
        out_specs=pl.BlockSpec((tm, out_f), lambda i: (i, 0)),
        compiler_params=pltpu.CompilerParams(
            dimension_semantics=("parallel",),
            vmem_limit_bytes=vmem_limit,
        ),
        cost_estimate=cost,
    )(x, w, b)
    return out


if __name__ == "__main__":
    key = jax.random.PRNGKey(0)
    k_x, k_w, k_b, k_x2 = jax.random.split(key, 4)

    B, IN, OUT = 8, 10, 5

    # Synthetic parameters matching nn.Linear(10, 5). PyTorch stores weight as
    # (OUT, IN); we keep the transposed (IN, OUT) copy for the kernel.
    w_pt = jax.random.uniform(k_w, (OUT, IN), jnp.float32, minval=-0.3, maxval=0.3)
    b = jax.random.uniform(k_b, (1, OUT), jnp.float32, minval=-0.3, maxval=0.3)
    w = w_pt.T  # (IN, OUT)

    x = jax.random.normal(k_x, (B, IN), jnp.float32)
    y_ref = x @ w + b

    # Case 1: tiny batch -> dispatch policy falls back to fused XLA matmul.
    y = jax.block_until_ready(simple_nn_forward(x, w, b))
    assert y.shape == (B, OUT)
    assert jnp.allclose(y, y_ref, atol=1e-5, rtol=1e-5)

    # Case 2: same tiny batch, force the Pallas kernel (single grid step,
    # tm shrunk to the 8-aligned batch).
    y_k = jax.block_until_ready(simple_nn_forward(x, w, b, force_pallas=True))
    assert y_k.shape == (B, OUT)
    assert jnp.allclose(y_k, y_ref, atol=1e-5, rtol=1e-5)

    # Case 3: batch not a multiple of the tile -> real grid with an overhanging
    # last block (no wrapper pad/slice; Pallas masks the OOB output rows),
    # exercising the multi-step pipeline with VMEM-resident weights.
    B2 = 300
    x2 = jax.random.normal(k_x2, (B2, IN), jnp.float32)
    y2 = jax.block_until_ready(
        simple_nn_forward(x2, w, b, tm=128, force_pallas=True))
    y2_ref = x2 @ w + b
    assert y2.shape == (B2, OUT)
    assert jnp.allclose(y2, y2_ref, atol=1e-5, rtol=1e-5)

    print("KERNEL_OK")
</pallas_src>

<mosaic_0001>
module attributes {stable_mosaic.version = 11 : i64} {
  func.func @_linear_kernel(%arg0: i32, %arg1: memref<8x10xf32, #tpu.memory_space<vmem>>, %arg2: memref<10x5xf32, #tpu.memory_space<vmem>>, %arg3: memref<1x5xf32, #tpu.memory_space<vmem>>, %arg4: memref<8x5xf32, #tpu.memory_space<vmem>>) attributes {dimension_semantics = [#tpu.dimension_semantics<parallel>], iteration_bounds = array<i64: 1>, scalar_prefetch = 0 : i64, scratch_operands = 0 : i64, tpu.core_type = #tpu.core_type<tc>, window_params = [{transform_indices = @transform_0, window_bounds = array<i64: 8, 10>}, {pipeline_mode = #tpu.pipeline_mode<synchronous>, transform_indices = @transform_1, window_bounds = array<i64: 10, 5>}, {pipeline_mode = #tpu.pipeline_mode<synchronous>, transform_indices = @transform_2, window_bounds = array<i64: 1, 5>}, {transform_indices = @transform_3, window_bounds = array<i64: 8, 5>}]} {
    %c0 = arith.constant 0 : index
    %c0_0 = arith.constant 0 : index
    %0 = vector.load %arg1[%c0, %c0_0] : memref<8x10xf32, #tpu.memory_space<vmem>>, vector<8x10xf32>
    %c0_1 = arith.constant 0 : index
    %c0_2 = arith.constant 0 : index
    %1 = vector.load %arg2[%c0_1, %c0_2] : memref<10x5xf32, #tpu.memory_space<vmem>>, vector<10x5xf32>
    %cst = arith.constant dense<0.000000e+00> : vector<8x5xf32>
    %2 = tpu.matmul %0, %1, %cst {dimension_numbers = #tpu.dot_dimension_numbers<[1], [0], [0], [1], [0, 0, 1, 1], [], []>} : vector<8x10xf32>, vector<10x5xf32>, vector<8x5xf32> -> vector<8x5xf32>
    %c0_3 = arith.constant 0 : index
    %c0_4 = arith.constant 0 : index
    %3 = vector.load %arg3[%c0_3, %c0_4] : memref<1x5xf32, #tpu.memory_space<vmem>>, vector<1x5xf32>
    %4 = vector.broadcast %3 : vector<1x5xf32> to vector<8x5xf32>
    %5 = arith.addf %2, %4 : vector<8x5xf32>
    %c0_5 = arith.constant 0 : index
    %c0_6 = arith.constant 0 : index
    %6 = vector.load %arg4[%c0_5, %c0_6] : memref<8x5xf32, #tpu.memory_space<vmem>>, vector<8x5xf32>
    tpu.vector_store %arg4[%c0_5, %c0_6], %5 {strides = array<i32>} : memref<8x5xf32, #tpu.memory_space<vmem>>, vector<8x5xf32>,
    return
  }
  func.func @transform_0(%arg0: i32) -> (i32, i32) {
    %c0_i32 = arith.constant 0 : i32
    %c0_i32_0 = arith.constant 0 : i32
    return %arg0, %c0_i32 : i32, i32
  }
  func.func @transform_1(%arg0: i32) -> (i32, i32) {
    %c0_i32 = arith.constant 0 : i32
    %c0_i32_0 = arith.constant 0 : i32
    %c0_i32_1 = arith.constant 0 : i32
    return %c0_i32, %c0_i32_0 : i32, i32
  }
  func.func @transform_2(%arg0: i32) -> (i32, i32) {
    %c0_i32 = arith.constant 0 : i32
    %c0_i32_0 = arith.constant 0 : i32
    %c0_i32_1 = arith.constant 0 : i32
    return %c0_i32, %c0_i32_0 : i32, i32
  }
  func.func @transform_3(%arg0: i32) -> (i32, i32) {
    %c0_i32 = arith.constant 0 : i32
    %c0_i32_0 = arith.constant 0 : i32
    return %arg0, %c0_i32 : i32, i32
  }
}

</mosaic_0001>

<bundles_post_ra>
// kernel: tpu_custom_call.1
= control target key start
LH: loop header
LB: loop body
LE: loop exit
PB: predicated region body
PF: predicated region fallthrough
CT: control target
= control target key end

     0   :  { %vm29_vm0 = vcmask 1041408   ;;  %v157_v1 = vmov 0.0   ;;  %vm158_vm1 = vmmov 0   ;;  %s195_s0 = inlined_call_operand.vmem [shape: f32[8,10], index: 0, kind: input, shape index: {}]   ;;  %s196_s1 = inlined_call_operand.vmem [shape: f32[10,5], index: 1, kind: input, shape index: {}]   ;;  %s197_s2 = inlined_call_operand.vmem [shape: f32[1,5], index: 2, kind: input, shape index: {}]   ;;  %s198_s3 = inlined_call_operand.hbm [shape: f32[8,5], index: 3, kind: output, shape index: {}]  }
   0x1   :  { %v17_v0 = vld [vmem:[%s196_s1 + $0x8] sm:$0x3]  ;;  %125 = vmatprep.subr.mxu0 %v157_v1  ;;  %v16_v2 = vld [vmem:[%s196_s1] sm:$0xff]  ;;  %129 = vmatprep.mubr.msk.f32.mxu0 %vm158_vm1, %v157_v1 }
   0x2   :  { %8 = vsyncpa [#allocation3], 0  ;;  %126 = vmatpush3.msk.msra.mxu0 %vm29_vm0, %v17_v0  ;;  %v15_v3 = vld [vmem:[%s195_s0] sm:$0xff]  ;;  %vm25_vm2 = vcmask 80896   ;;  %s159_s20 = smov [#allocation2]   ;;  %vm103_vm3 = vcmask 39936  }
   0x3   :  { %127 = vmatprep.subr.mxu0 %v157_v1  ;;  %v119_v4 = vld [vmem:[%s197_s2] ss:$0 sm:$0xff]  ;;  %s111_s21 = sshll.u32 %s159_s20, 4  ;;  %s112_s21 = int_to_ptr.vmem [resolvable:$true] %s111_s21 }
   0x4   :  { %128 = vmatpush3.msra.mxu0 %v16_v2  ;;  %s135_s1 = scalar_lea.vmem %s112_s21, 128  ;;  %p140_p1 = scmp.lt.s32.totalorder %s112_s21, %s112_s21 }
   0x5   :  { %130 = vmatmul.mubr.msk.f32.vlgmr.msra.gmra.mxu0 %vm25_vm2, %v15_v3  ;;  %p136_p0 = scmp.ne.s32.totalorder %s112_s21, %s135_s1  ;;  %p141_p2 = scmp.lt.s32.totalorder %s135_s1, %s135_s1 }
   0x7   :  { %p142_p3 = por %p141_p2, %p140_p1 }
   0x9   :  { %p143_p4 = pnand %p142_p3, %p136_p0 }
  0xc5   :  { %v99_v5 = vpop.f32.mrf.mxu0 }
  0xc6   :  { %v100_v6 = vadd.f32 %v119_v4, %v99_v5 }
  0xc7   :  { %v131_v7 = vpop.f32.mrf.mxu0 }
  0xc8   :  { %104 = vst.msk [vmem:[#allocation2] sm:$0xff] %vm103_vm3, %v100_v6 }
  0xc9   :  { %146 = shalt.err (!%p143_p4)
}
  0xca   :  { %114 = dma.vmem_to_hbm [thread:$0]  %s112_s21, 128, %s198_s3, [#allocation3]  }
  0xcb   :  { %155 = dma.done.wait [#allocation3], 128  }
  0xcc   :  { %156 = vsyncadd [#allocation3], 4294967168 }
  0xcd   :  { %118 = vsyncpa [#allocation3], 1 }

</bundles_post_ra>
